<compile_context>
chip_gen: v7x
topology: tpu7x:2x2x1
jax: 0.10.0
libtpu: 0.0.40
codegen_flags: <defaults>
</compile_context>

<pallas_src>
import functools

import jax
import jax.numpy as jnp
from jax.experimental import pallas as pl
from jax.experimental.pallas import tpu as pltpu

_LANE = 128
_SUB = 8
_MAX_TILE_ROWS = 4096                 # 4096*128*4B = 2 MiB per f32 MSE input buffer
_REG_BLOCK_TARGET_BYTES = 1 << 20     # ~1 MiB regularizer input block target
_VMEM_LIMIT = 32 * 1024 * 1024        # <= scoped/physical VMEM on v5e/v6e/v7x


def _round_up(x, m):
    return ((x + m - 1) // m) * m


@functools.lru_cache(maxsize=None)
def _roll_is_jnp_convention():
    """True iff pltpu.roll(x, s, axis)[..., i] == x[..., (i - s) % n] (jnp.roll).

    Direction probe for the hardware lane rotate so the W-axis forward-diff
    mask below is exact regardless of the rotate convention.  Runs one tiny
    kernel once (cached); call outside jit.
    """
    def kernel(x_ref, o_ref):
        o_ref[...] = pltpu.roll(x_ref[...], 1, axis=1)

    x = jax.lax.broadcasted_iota(jnp.int32, (_SUB, _LANE), 1)
    out = pl.pallas_call(
        kernel, out_shape=jax.ShapeDtypeStruct((_SUB, _LANE), jnp.int32))(x)
    return int(jax.device_get(out)[0, 0]) == _LANE - 1


# --------------------------------------------------------------------------
# Kernel 1: MSE (reduction='sum') partial sums over lane-dense row tiles.
# --------------------------------------------------------------------------
def _mse_partial_kernel(a_ref, f_ref, out_ref, *, rows, tile_rows):
    d = a_ref[...].astype(jnp.float32) - f_ref[...].astype(jnp.float32)
    sq = d * d
    if rows % tile_rows:
        # Ragged last tile: rows past `rows` are OOB garbage -> mask before the
        # sum.  The valid count is static, so no scalar prefetch is needed.
        row = jax.lax.broadcasted_iota(jnp.int32, sq.shape, 0)
        sq = jnp.where(row < rows - pl.program_id(0) * tile_rows, sq, 0.0)
    out_ref[...] = jnp.broadcast_to(jnp.sum(sq), (1, _SUB, _LANE))


def _mse_sum(act, feat):
    total = int(act.size)
    a = act.reshape(-1)
    f = feat.reshape(-1)
    rem = total % _LANE
    if rem:
        # TODO(synk): total not a lane multiple -> minimal (<128 elem) zero pad;
        # this still streams both operands through an XLA pad.  Element-exact
        # in-kernel masking would require giving up the lane-dense 2-D view.
        a = jnp.pad(a, (0, _LANE - rem))
        f = jnp.pad(f, (0, _LANE - rem))
    rows = pl.cdiv(total, _LANE)
    a = a.reshape(rows, _LANE)
    f = f.reshape(rows, _LANE)

    # Big tiles amortize the ~0.35us/step overhead; /4 keeps >= ~4 parallel
    # steps for v7x's two TensorCores; multiple of 16 keeps bf16 sublane
    # packing aligned.
    tile_rows = min(_MAX_TILE_ROWS, _round_up(pl.cdiv(rows, 4), 16))
    if tile_rows >= rows:
        tile_rows = rows                      # single full-extent block
    num_tiles = pl.cdiv(rows, tile_rows)

    kernel = functools.partial(_mse_partial_kernel, rows=rows,
                               tile_rows=tile_rows)
    bytes_acc = int(a.size * a.dtype.itemsize + f.size * f.dtype.itemsize
                    + num_tiles * _SUB * _LANE * 4)
    partials = pl.pallas_call(
        kernel,
        grid=(num_tiles,),
        in_specs=[
            pl.BlockSpec((tile_rows, _LANE), lambda i: (i, 0)),
            pl.BlockSpec((tile_rows, _LANE), lambda i: (i, 0)),
        ],
        out_specs=pl.BlockSpec((1, _SUB, _LANE), lambda i: (i, 0, 0)),
        out_shape=jax.ShapeDtypeStruct((num_tiles, _SUB, _LANE), jnp.float32),
        compiler_params=pltpu.CompilerParams(
            dimension_semantics=("parallel",),
            vmem_limit_bytes=_VMEM_LIMIT),
        cost_estimate=pl.CostEstimate(
            flops=3 * total, transcendentals=0, bytes_accessed=bytes_acc),
    )(a, f)
    return jnp.sum(partials[:, 0, 0])


# --------------------------------------------------------------------------
# Kernel 2: local_energy + local_frequency partial sums, Tb T-slices per step.
# --------------------------------------------------------------------------
def _reg_partial_kernel(x_ref, *refs, T, Tb, l_lambda, alpha, tv_lambda,
                        energy_scale, tv_scale, fwd_shift):
    tvl_sp, tvl_tm = tv_lambda
    if tvl_tm > 0:
        xn_ref, out_ref = refs
    else:
        (out_ref,) = refs

    N, C, _, H, W = x_ref.shape
    tb = pl.program_id(0)
    ragged = (T % Tb) != 0

    x = x_ref[...].astype(jnp.float32)            # (N, C, Tb, H, W)
    if ragged:
        # Zero slices past the end of the array (OOB garbage in the last block).
        nvalid = T - tb * Tb                      # >= Tb for all but the last block
        tmask = (jax.lax.broadcasted_iota(jnp.int32, (Tb, 1), 0)
                 < nvalid).reshape(1, 1, Tb, 1, 1)
        x = jnp.where(tmask, x, 0.0)

    partial = jnp.float32(0.0)

    # ---- local_energy: sum( (sum_c x^2) ^ (alpha/2) ) ------------------------
    if l_lambda > 0:
        ce = jnp.sum(x * x, axis=1)               # (N, Tb, H, W), >= 0
        half_alpha = alpha / 2.0
        if float(half_alpha).is_integer():
            powed = ce ** int(half_alpha)
        elif alpha == 3:
            powed = ce * jnp.sqrt(ce)             # exact x^1.5 for x >= 0 (EUP)
        else:
            powed = jnp.where(ce > 0, jnp.power(ce, half_alpha), 0.0)
        partial = partial + energy_scale * jnp.sum(powed)

    # ---- local_frequency (TV): forward diffs, zero trailing border -----------
    if tvl_sp > 0 and W > 1:
        # Lane-axis forward diff: XLU roll to the forward neighbour plus one
        # select that zeroes the wrap lane (W-1).  Exact, no width-1 lane
        # slices, no large-sum cancellation.
        x2 = x.reshape(N * C * Tb * H, W)
        dw = pltpu.roll(x2, fwd_shift, axis=1) - x2
        lane = jax.lax.broadcasted_iota(jnp.int32, dw.shape, 1)
        dw = jnp.where(lane < W - 1, dw, 0.0)
        partial = partial + tv_scale * tvl_sp * jnp.sum(dw * dw)

    if tvl_sp > 0 and H > 1:
        # Sublane-axis forward diff (trailing row drops out of the sum).
        # TODO(synk): a sublane roll + mask would avoid the (H-1)-row relayout,
        # but second-minor rotates on rank-5 values are a lowering risk; the
        # slice is exact and only costs layout work.
        dh = x[:, :, :, 1:, :] - x[:, :, :, :-1, :]
        partial = partial + tv_scale * tvl_sp * jnp.sum(dh * dh)

    if tvl_tm > 0:
        # In-block temporal forward diffs (leading-axis slices = tile selects).
        if Tb > 1:
            dt = x[:, :, 1:, :, :] - x[:, :, :-1, :, :]
            if ragged:
                dmask = (jax.lax.broadcasted_iota(jnp.int32, (Tb - 1, 1), 0)
                         < (T - 1 - tb * Tb)).reshape(1, 1, Tb - 1, 1, 1)
                dt = jnp.where(dmask, dt, 0.0)
            partial = partial + tv_scale * tvl_tm * jnp.sum(dt * dt)
        # Block-seam diff against the first slice of the next T block.  The
        # BlockSpec clamps its slice index to T-1, so the global border (and,
        # via the predicate, the ragged tail) contributes exactly 0.
        xn = xn_ref[...].astype(jnp.float32)      # (N, C, H, W)
        seam = xn - x[:, :, Tb - 1, :, :]
        seam_valid = ((tb + 1) * Tb) < T
        partial = partial + tv_scale * tvl_tm * jnp.where(
            seam_valid, jnp.sum(seam * seam), 0.0)

    out_ref[...] = jnp.broadcast_to(partial, (1, _SUB, _LANE))


def _regularizer_sum(inp, *, l_lambda, alpha, tv_lambda, B):
    N, C, T, H, W = inp.shape
    V = B / 6.5
    energy_scale = (1.0 / (T * H * W * (B ** alpha) * l_lambda)
                    if l_lambda > 0 else 0.0)
    tv_scale = 1.0 / (T * H * W * V * V)

    # Tb temporal slices per grid step: big enough to amortize per-step
    # overhead (~1 MiB blocks), small enough for VMEM on every generation, and
    # >= 2 blocks when T >= 2 so the "parallel" axis can use both v7x TCs.
    # TODO(synk): very large frames (single slice >> 1 MiB) would additionally
    # want an H tile (with a clamped-neighbour row for the H seam).
    slice_bytes = N * C * H * W * inp.dtype.itemsize
    Tb = max(1, min(T, _REG_BLOCK_TARGET_BYTES // max(slice_bytes, 1)))
    if T >= 2:
        Tb = min(Tb, pl.cdiv(T, 2))
    num_tb = pl.cdiv(T, Tb)

    use_temporal = tv_lambda[1] > 0
    fwd_shift = 0
    if tv_lambda[0] > 0 and W > 1:
        fwd_shift = (W - 1) if _roll_is_jnp_convention() else 1

    kernel = functools.partial(
        _reg_partial_kernel, T=T, Tb=Tb, l_lambda=l_lambda, alpha=alpha,
        tv_lambda=tv_lambda, energy_scale=energy_scale, tv_scale=tv_scale,
        fwd_shift=fwd_shift)

    cur_spec = pl.BlockSpec((N, C, Tb, H, W), lambda t: (0, 0, t, 0, 0))
    in_specs = [cur_spec]
    args = [inp]
    if use_temporal:
        # First slice of the next T block, clamped at the border (block size 1
        # along T -> the index map returns an absolute slice index).
        nxt_spec = pl.BlockSpec(
            (N, C, None, H, W),
            lambda t: (0, 0, jnp.minimum((t + 1) * Tb, T - 1), 0, 0))
        in_specs.append(nxt_spec)
        args.append(inp)

    bytes_acc = int(inp.size * inp.dtype.itemsize)
    if use_temporal:
        bytes_acc += int(num_tb * slice_bytes)    # clamped seam re-reads
    transc = int(N * T * H * W) if l_lambda > 0 else 0

    partials = pl.pallas_call(
        kernel,
        grid=(num_tb,),
        in_specs=in_specs,
        out_specs=pl.BlockSpec((1, _SUB, _LANE), lambda t: (t, 0, 0)),
        out_shape=jax.ShapeDtypeStruct((num_tb, _SUB, _LANE), jnp.float32),
        compiler_params=pltpu.CompilerParams(
            dimension_semantics=("parallel",),
            vmem_limit_bytes=_VMEM_LIMIT),
        cost_estimate=pl.CostEstimate(
            flops=12 * int(inp.size), transcendentals=transc,
            bytes_accessed=bytes_acc + int(num_tb * _SUB * _LANE * 4)),
    )(*args)
    return jnp.sum(partials[:, 0, 0])


# --------------------------------------------------------------------------
# Public wrapper: mirrors MSE_with_regulariztion(input=inp, ...)(act, feat).
# --------------------------------------------------------------------------
def mse_with_regularization(act, feat, inp, *, L_lambda=0.0, alpha=3,
                            TV_lambda=(0.0, 0.0), B=160.0 / 255.0):
    l_lambda = float(L_lambda)
    tv_lambda = (float(TV_lambda[0]), float(TV_lambda[1]))
    loss = _mse_sum(act, feat)
    if l_lambda > 0 or (tv_lambda[0] + tv_lambda[1]) > 0:
        loss = loss + _regularizer_sum(inp, l_lambda=l_lambda, alpha=alpha,
                                       tv_lambda=tv_lambda, B=float(B))
    return loss


# --------------------------------------------------------------------------
# Pure-JAX reference (mirrors the PyTorch rolls + border fixups).
# --------------------------------------------------------------------------
def _reference(act, feat, inp, L_lambda, alpha, TV_lambda, B):
    V = B / 6.5
    _, _, T, H, W = inp.shape
    loss = jnp.sum((act - feat) ** 2)
    if L_lambda > 0:
        ce = jnp.sum(inp ** 2, axis=1)
        r_b = jnp.sum(jnp.power(ce, alpha / 2.0))
        r_b = r_b / (T * H * W * (B ** alpha) * L_lambda)
        loss = loss + r_b
    if (TV_lambda[0] + TV_lambda[1]) > 0:
        d1 = jnp.roll(inp, -1, -1).at[:, :, :, :, -1].set(inp[:, :, :, :, -1]) - inp
        d2 = jnp.roll(inp, -1, -2).at[:, :, :, -1, :].set(inp[:, :, :, -1, :]) - inp
        d3 = jnp.roll(inp, -1, -3).at[:, :, -1, :, :].set(inp[:, :, -1, :, :]) - inp
        tv_sp = (d1 ** 2 + d2 ** 2) * TV_lambda[0]
        tv_tm = (d3 ** 2) * TV_lambda[1]
        loss = loss + jnp.sum(tv_sp + tv_tm) / (T * H * W * V ** 2)
    return loss


if __name__ == "__main__":
    key = jax.random.PRNGKey(0)
    k1, k2, k3, k4, k5, k6 = jax.random.split(key, 6)
    B = 160.0 / 255.0

    # --- Config A: aligned shapes (non-ragged tiles), alpha=3 (sqrt path) ----
    act_a = jax.random.normal(k1, (2, 4, 16, 16), dtype=jnp.float32)
    feat_a = jax.random.normal(k2, (2, 4, 16, 16), dtype=jnp.float32)
    inp_a = jax.random.normal(k3, (1, 3, 4, 8, 128), dtype=jnp.float32)
    La, aa, tva = 0.01, 3, (1.5, 0.5)
    out_a = mse_with_regularization(act_a, feat_a, inp_a, L_lambda=La,
                                    alpha=aa, TV_lambda=tva, B=B)
    out_a = jax.block_until_ready(out_a)
    ref_a = _reference(act_a, feat_a, inp_a, La, aa, tva, B)
    assert jnp.allclose(out_a, ref_a, rtol=2e-3, atol=1e-3), (out_a, ref_a)

    # --- Config B: ragged MSE row tile + ragged T block, alpha=2 -------------
    act_b = jax.random.normal(k4, (2, 16, 12, 12), dtype=jnp.float32)
    feat_b = jax.random.normal(k5, (2, 16, 12, 12), dtype=jnp.float32)
    inp_b = jax.random.normal(k6, (1, 2, 5, 16, 128), dtype=jnp.float32)
    Lb, ab, tvb = 0.02, 2, (0.7, 1.3)
    out_b = mse_with_regularization(act_b, feat_b, inp_b, L_lambda=Lb,
                                    alpha=ab, TV_lambda=tvb, B=B)
    out_b = jax.block_until_ready(out_b)
    ref_b = _reference(act_b, feat_b, inp_b, Lb, ab, tvb, B)
    assert jnp.allclose(out_b, ref_b, rtol=2e-3, atol=1e-3), (out_b, ref_b)

    print("KERNEL_OK")
</pallas_src>

<mosaic_0001>
module attributes {stable_mosaic.version = 11 : i64} {
  func.func @_mse_partial_kernel(%arg0: i32, %arg1: memref<16x128xf32, #tpu.memory_space<vmem>>, %arg2: memref<16x128xf32, #tpu.memory_space<vmem>>, %arg3: memref<1x8x128xf32, #tpu.memory_space<vmem>>) attributes {dimension_semantics = [#tpu.dimension_semantics<parallel>], iteration_bounds = array<i64: 1>, scalar_prefetch = 0 : i64, scratch_operands = 0 : i64, tpu.core_type = #tpu.core_type<tc>, window_params = [{transform_indices = @transform_0, window_bounds = array<i64: 16, 128>}, {transform_indices = @transform_1, window_bounds = array<i64: 16, 128>}, {transform_indices = @transform_2, window_bounds = array<i64: 1, 8, 128>}]} {
    %c0 = arith.constant 0 : index
    %c0_0 = arith.constant 0 : index
    %0 = vector.load %arg1[%c0, %c0_0] : memref<16x128xf32, #tpu.memory_space<vmem>>, vector<16x128xf32>
    %c0_1 = arith.constant 0 : index
    %c0_2 = arith.constant 0 : index
    %1 = vector.load %arg2[%c0_1, %c0_2] : memref<16x128xf32, #tpu.memory_space<vmem>>, vector<16x128xf32>
    %2 = arith.subf %0, %1 : vector<16x128xf32>
    %3 = arith.mulf %2, %2 : vector<16x128xf32>
    %4 = vector.shape_cast %3 : vector<16x128xf32> to vector<1x16x128xf32>
    %cst = arith.constant dense<0.000000e+00> : vector<1xf32>
    %5 = vector.multi_reduction <add>, %4, %cst [1, 2] : vector<1x16x128xf32> to vector<1xf32>
    %6 = vector.shape_cast %5 : vector<1xf32> to vector<1x1x1xf32>
    %7 = vector.extract %6[0, 0, 0] : f32 from vector<1x1x1xf32>
    %8 = vector.broadcast %7 : f32 to vector<1x8x128xf32>
    %c0_3 = arith.constant 0 : index
    %c0_4 = arith.constant 0 : index
    %c0_5 = arith.constant 0 : index
    %9 = vector.load %arg3[%c0_3, %c0_4, %c0_5] : memref<1x8x128xf32, #tpu.memory_space<vmem>>, vector<1x8x128xf32>
    tpu.vector_store %arg3[%c0_3, %c0_4, %c0_5], %8 {strides = array<i32>} : memref<1x8x128xf32, #tpu.memory_space<vmem>>, vector<1x8x128xf32>,
    return
  }
  func.func @transform_0(%arg0: i32) -> (i32, i32) {
    %c0_i32 = arith.constant 0 : i32
    %c0_i32_0 = arith.constant 0 : i32
    return %arg0, %c0_i32 : i32, i32
  }
  func.func @transform_1(%arg0: i32) -> (i32, i32) {
    %c0_i32 = arith.constant 0 : i32
    %c0_i32_0 = arith.constant 0 : i32
    return %arg0, %c0_i32 : i32, i32
  }
  func.func @transform_2(%arg0: i32) -> (i32, i32, i32) {
    %c0_i32 = arith.constant 0 : i32
    %c0_i32_0 = arith.constant 0 : i32
    %c0_i32_1 = arith.constant 0 : i32
    return %arg0, %c0_i32, %c0_i32_0 : i32, i32, i32
  }
}

</mosaic_0001>

<bundles_post_ra>
// kernel: tpu_custom_call.1
= control target key start
LH: loop header
LB: loop body
LE: loop exit
PB: predicated region body
PF: predicated region fallthrough
CT: control target
= control target key end

     0   :  { %7 = vsyncpa [#allocation3], 0  ;;  %s211_s0 = inlined_call_operand.hbm [shape: f32[16,128], index: 0, kind: input, shape index: {}]   ;;  %s212_s1 = inlined_call_operand.hbm [shape: f32[16,128], index: 1, kind: input, shape index: {}]   ;;  %s213_s2 = inlined_call_operand.hbm [shape: f32[1,8,128], index: 2, kind: output, shape index: {}]  }
   0x1   :  { %8 = vsyncpa [#allocation6], 0 }
   0x2   :  { %9 = vsyncpa [#allocation4], 0  ;;  %s155_s9 = smov [#allocation2]   ;;  %s83_s13 = scalar_lea.hbm %s211_s0, 256 }
   0x3   :  { %s15_s10 = sshll.u32 %s155_s9, 4  ;;  %p84_p0 = scmp.ne.s32.totalorder %s211_s0, %s83_s13  ;;  %s16_s10 = int_to_ptr.vmem [resolvable:$true] %s15_s10 }
   0x4   :  { %p87_p1 = scmp.lt.u32.totalorder %s83_s13, %s211_s0 }
   0x6   :  { %p89_p2 = pnand %p87_p1, %p84_p0 }
   0x8   :  { %92 = shalt.err (!%p89_p2)
}
   0x9   :  { %s93_s18 = scalar_lea.vmem %s16_s10, 256  ;;  %p98_p4 = scmp.lt.s32.totalorder %s16_s10, %s16_s10 }
   0xa   :  { %p94_p3 = scmp.ne.s32.totalorder %s16_s10, %s93_s18  ;;  %p99_p5 = scmp.lt.s32.totalorder %s93_s18, %s93_s18 }
   0xc   :  { %p100_p6 = por %p99_p5, %p98_p4 }
   0xe   :  { %p101_p7 = pnand %p100_p6, %p94_p3 }
  0x10   :  { %104 = shalt.err (!%p101_p7)
}
  0x11   :  { %s156_s19 = smov 128   ;;  %s157_s20 = smov 8  }
  0x12   :  { %21 = dma.hbm_to_vmem [thread:$0]  %s211_s0, 256, %s16_s10, [#allocation3], %s156_s19, %s156_s19, %s157_s20  }
  0x13   :  { %s158_s23 = smov [#allocation5]   ;;  %s105_s27 = scalar_lea.hbm %s212_s1, 256 }
  0x14   :  { %s27_s24 = sshll.u32 %s158_s23, 4  ;;  %p106_p8 = scmp.ne.s32.totalorder %s212_s1, %s105_s27  ;;  %s28_s24 = int_to_ptr.vmem [resolvable:$true] %s27_s24 }
  0x15   :  { %p109_p9 = scmp.lt.u32.totalorder %s105_s27, %s212_s1 }
  0x17   :  { %p111_p10 = pnand %p109_p9, %p106_p8 }
  0x19   :  { %114 = shalt.err (!%p111_p10)
}
  0x1a   :  { %s115_s4 = scalar_lea.vmem %s28_s24, 256  ;;  %p120_p12 = scmp.lt.s32.totalorder %s28_s24, %s28_s24 }
  0x1b   :  { %p116_p11 = scmp.ne.s32.totalorder %s28_s24, %s115_s4  ;;  %p121_p13 = scmp.lt.s32.totalorder %s115_s4, %s115_s4 }
  0x1d   :  { %p122_p0 = por %p121_p13, %p120_p12 }
  0x1f   :  { %p123_p1 = pnand %p122_p0, %p116_p11 }
  0x21   :  { %126 = shalt.err (!%p123_p1)
}
  0x22   :  { %33 = dma.hbm_to_vmem [thread:$0]  %s212_s1, 256, %s28_s24, [#allocation6], %s156_s19, %s156_s19, %s157_s20  }
  0x23   :  { %149 = dma.done.wait [#allocation3], 256  }
  0x24   :  { %150 = vsyncadd [#allocation3], 4294967040 }
  0x25   :  { %151 = dma.done.wait [#allocation6], 256  }
  0x26   :  { %152 = vsyncadd [#allocation6], 4294967040  ;;  %v40_v0 = vld [vmem:[#allocation2] sm:$0xff]  ;;  %v41_v1 = vld [vmem:[#allocation2 + $0x8] sm:$0xff]  ;;  %s159_s1 = smov [#allocation7]  }
  0x27   :  { %v42_v2 = vld [vmem:[#allocation5] sm:$0xff]  ;;  %v43_v3 = vld [vmem:[#allocation5 + $0x8] sm:$0xff]  ;;  %s66_s6 = sshll.u32 %s159_s1, 4  ;;  %s67_s6 = int_to_ptr.vmem [resolvable:$true] %s66_s6 }
  0x28   :  { %v44_v4 = vsub.f32 %v40_v0, %v42_v2  ;;  %v45_v5 = vsub.f32 %v41_v1, %v43_v3  ;;  %s127_s8 = scalar_lea.vmem %s67_s6, 128  ;;  %p132_p3 = scmp.lt.s32.totalorder %s67_s6, %s67_s6 }
  0x29   :  { %p128_p2 = scmp.ne.s32.totalorder %s67_s6, %s127_s8  ;;  %p133_p4 = scmp.lt.s32.totalorder %s127_s8, %s127_s8 }
  0x2a   :  { %v46_v6 = vmul.f32 %v44_v4, %v44_v4  ;;  %v47_v7 = vmul.f32 %v45_v5, %v45_v5 }
  0x2b   :  { %p134_p5 = por %p133_p4, %p132_p3 }
  0x2c   :  { %v48_v8 = vadd.f32 %v47_v7, %v46_v6 }
  0x2d   :  { %p135_p6 = pnand %p134_p5, %p128_p2 }
  0x2e   :  { %49 = vadd.xlane.f32.xlu0 %v48_v8 }
  0xbb   :  { %v50_v9 = vpop.xlane.xlu0 %49 }
  0xbc   :  { %v51_v10 = vrot.slane %v50_v9, 4 }
  0xbe   :  { %v52_v11 = vadd.f32 %v51_v10, %v50_v9 }
  0xc0   :  { %v53_v12 = vrot.slane %v52_v11, 2 }
  0xc2   :  { %v54_v13 = vadd.f32 %v53_v12, %v52_v11 }
  0xc4   :  { %v55_v14 = vrot.slane %v54_v13, 1 }
  0xc6   :  { %v56_v15 = vadd.f32 %v55_v14, %v54_v13 }
  0xc8   :  { %76 = vpush %v56_v15 }
  0xf9   :  { %s77_s7 = spop %76 }
  0xfa   :  { %v58_v16 = vstv %s77_s7 }
  0xfb   :  { %59 = vst [vmem:[#allocation7] sm:$0xff] %v58_v16 }
  0xfc   :  { %138 = shalt.err (!%p135_p6)
}
  0xfd   :  { %s139_s11 = scalar_lea.hbm %s213_s2, 128 }
  0xfe   :  { %p140_p7 = scmp.ne.s32.totalorder %s213_s2, %s139_s11  ;;  %p143_p8 = scmp.lt.u32.totalorder %s139_s11, %s213_s2 }
 0x100   :  { %p145_p9 = pnand %p143_p8, %p140_p7 }
 0x102   :  { %148 = shalt.err (!%p145_p9)
}
 0x103   :  { %69 = dma.vmem_to_hbm [thread:$0]  %s67_s6, 128, %s213_s2, [#allocation4]  }
 0x104   :  { %153 = dma.done.wait [#allocation4], 128  }
 0x105   :  { %154 = vsyncadd [#allocation4], 4294967168 }
 0x106   :  { %73 = vsyncpa [#allocation3], 1 }
 0x107   :  { %74 = vsyncpa [#allocation6], 1 }
 0x108   :  { %75 = vsyncpa [#allocation4], 1 }

</bundles_post_ra>
